<compile_context>
chip_gen: v6e
topology: v6e:2x2x1
jax: 0.10.0
libtpu: 0.0.40
codegen_flags: <defaults>
</compile_context>

<pallas_src>
from typing import NamedTuple, Optional

import jax
import jax.numpy as jnp
from jax.experimental import pallas as pl
from jax.experimental.pallas import tpu as pltpu


def _round_up(a: int, b: int) -> int:
    return ((a + b - 1) // b) * b


# ---------------------------------------------------------------------------
# Generation-aware budgets.
#   v7x : 64 MiB VMEM per TC, 2 TCs/chip  -> conservative tile budget.
#   v5e / v6e : 128 MiB VMEM, 1 TC        -> large tiles / grid collapse.
# ---------------------------------------------------------------------------
def _tpu_budgets():
    vmem_phys = 128 * 1024 * 1024
    try:
        info = pltpu.get_tpu_info()
        vmem_phys = int(getattr(info, "vmem_capacity_bytes", vmem_phys))
    except Exception:
        pass
    two_cores = False
    try:
        two_cores = "v7" in jax.devices()[0].device_kind.lower()
    except Exception:
        pass
    if vmem_phys <= 64 * 1024 * 1024:
        # v7x-class part.
        return dict(tile_budget=24 * 1024 * 1024,
                    vmem_cap=46 * 1024 * 1024,
                    tn_cap=512,
                    two_cores=True)
    return dict(tile_budget=48 * 1024 * 1024,
                vmem_cap=64 * 1024 * 1024,
                tn_cap=1024,
                two_cores=two_cores)


# ---------------------------------------------------------------------------
# Kernels
# ---------------------------------------------------------------------------
def _linear_kernel_single(x_ref, w_ref, b_ref, o_ref):
    """Collapsed reduction (single k-step): one dot, bias add, single store."""
    o_ref[...] = (
        jnp.dot(x_ref[...], w_ref[...], preferred_element_type=jnp.float32)
        + b_ref[...]
    ).astype(o_ref.dtype)


def _linear_kernel_f32_multi(x_ref, w_ref, b_ref, o_ref):
    """f32 output: accumulate directly into the resident output block.
    Bias is folded into the first k-step (no zero-init / final-add passes)."""
    k = pl.program_id(2)
    contrib = jnp.dot(x_ref[...], w_ref[...], preferred_element_type=jnp.float32)

    @pl.when(k == 0)
    def _():
        o_ref[...] = b_ref[...] + contrib

    @pl.when(k > 0)
    def _():
        o_ref[...] += contrib


def _linear_kernel_acc_multi(x_ref, w_ref, b_ref, o_ref, acc_ref):
    """Low-precision output: f32 VMEM accumulator, bias folded into k==0,
    cast once at the last k-step."""
    k = pl.program_id(2)
    contrib = jnp.dot(x_ref[...], w_ref[...], preferred_element_type=jnp.float32)

    @pl.when(k == 0)
    def _():
        acc_ref[...] = b_ref[...] + contrib

    @pl.when(k > 0)
    def _():
        acc_ref[...] += contrib

    @pl.when(k == pl.num_programs(2) - 1)
    def _():
        o_ref[...] = acc_ref[...].astype(o_ref.dtype)


# ---------------------------------------------------------------------------
# One-time parameter preparation (analogue of constructing the nn.Module)
# ---------------------------------------------------------------------------
class LinearParams(NamedTuple):
    weight_t: jax.Array     # (Kp, Np) — transposed / cast / padded ONCE
    bias2d: jax.Array       # (1, Np) float32
    in_features: int
    out_features: int
    tn: int
    tk: int
    k_padded: int
    n_padded: int
    vmem_cap: int


def init_linear_params(weight, bias=None, *,
                       compute_dtype: Optional[jnp.dtype] = None) -> LinearParams:
    """Prepare LinearLayer parameters once.

    weight : (out_features, in_features)   — nn.Linear layout
    bias   : (out_features,) or None
    compute_dtype : optional storage dtype for the weight (e.g. jnp.bfloat16
        on v6e/v7x — halves weight HBM traffic); accumulation stays float32.
        On v7x do NOT use int8 (fp8 only on its MXU).
    """
    out_features, in_features = weight.shape
    w_t = weight.T                                   # (K, N)
    if compute_dtype is not None:
        w_t = w_t.astype(compute_dtype)
    itemsize = jnp.dtype(w_t.dtype).itemsize

    budgets = _tpu_budgets()
    K, N = in_features, out_features

    # ---- N tiling: small heads stay unpadded (full-extent last dim) -------
    if N <= 256:
        tn, n_padded = N, N
    else:
        n128 = _round_up(N, 128)
        tn = min(n128, budgets["tn_cap"])
        if budgets["two_cores"] and n128 // tn < 2:
            # Give both v7x TensorCores a j-block to share weight streaming.
            tn = max(128, (n128 // 2 // 128) * 128)
        n_padded = _round_up(n128, tn)

    # ---- K tiling: collapse the reduction when the tiles fit the budget ---
    tm_max = 256

    def tile_bytes(tk):
        return (2 * (tm_max * tk + tk * tn) * itemsize   # double-buffered x, W
                + 2 * tm_max * tn * 4                    # out / acc block
                + 2 * tn * 4)                            # bias

    if tile_bytes(K) <= budgets["tile_budget"]:
        tk, k_padded = K, K                              # grid collapse
    else:
        tk = 2048
        while tk > 128 and tile_bytes(tk) > budgets["tile_budget"]:
            tk //= 2
        k_padded = _round_up(K, tk)

    # Pad ONCE here (zeros are neutral for the matmul); never per call.
    if (k_padded, n_padded) != (K, N):
        w_t = jnp.pad(w_t, ((0, k_padded - K), (0, n_padded - N)))
    if bias is None:
        bias = jnp.zeros((N,), jnp.float32)
    bias2d = jnp.pad(bias.astype(jnp.float32), (0, n_padded - N)).reshape(1, n_padded)

    return LinearParams(w_t, bias2d, K, N, tn, tk, k_padded, n_padded,
                        budgets["vmem_cap"])


# ---------------------------------------------------------------------------
# Forward pass
# ---------------------------------------------------------------------------
def linear_layer_forward(x, params: LinearParams):
    """LinearLayer.forward (inference): flatten -> dropout(identity) -> linear."""
    squeeze_out = False
    if x.ndim == 1:
        x = x.reshape(1, -1)
        squeeze_out = True
    elif x.ndim > 2:
        x = x.reshape(x.shape[0], -1)                    # _try_squeeze
    # TODO(synk): training-mode dropout (mask + 1/(1-p) scale) not implemented;
    # nn.Dropout is identity at inference.
    # norm=None, act_func=None in the reference config -> skipped.

    w_t, bias2d = params.weight_t, params.bias2d
    K, N = params.in_features, params.out_features
    tn, tk = params.tn, params.tk
    Kp, Np = params.k_padded, params.n_padded

    B = x.shape[0]
    assert x.shape[1] == K, f"in_features mismatch: {x.shape[1]} vs {K}"

    out_dtype = x.dtype
    if x.dtype != w_t.dtype:
        x = x.astype(w_t.dtype)                          # cheap: x is small
    x_itemsize = jnp.dtype(x.dtype).itemsize
    w_itemsize = jnp.dtype(w_t.dtype).itemsize
    out_itemsize = jnp.dtype(out_dtype).itemsize

    # M tiling: small batches use a full-extent block (no sublane padding).
    if B <= 256:
        tm, Bp = B, B
    else:
        tm = 256
        Bp = _round_up(B, tm)

    pad_m, pad_k = Bp - B, Kp - K
    if pad_m or pad_k:
        x = jnp.pad(x, ((0, pad_m), (0, pad_k)))

    grid = (Bp // tm, Np // tn, Kp // tk)
    kt = grid[2]

    if kt == 1:
        kernel, scratch_shapes = _linear_kernel_single, []
    elif out_dtype == jnp.float32:
        kernel, scratch_shapes = _linear_kernel_f32_multi, []
    else:
        kernel = _linear_kernel_acc_multi
        scratch_shapes = [pltpu.VMEM((tm, tn), jnp.float32)]

    vmem_need = (2 * (tm * tk * x_itemsize + tk * tn * w_itemsize)
                 + 2 * tm * tn * out_itemsize
                 + (tm * tn * 4 if scratch_shapes else 0)
                 + 2 * tn * 4)
    vmem_limit = int(min(max(2 * vmem_need, 32 * 1024 * 1024), params.vmem_cap))

    # Honest traffic estimate: x re-streamed per j block, W per i block.
    cost = pl.CostEstimate(
        flops=2 * Bp * Kp * Np,
        transcendentals=0,
        bytes_accessed=int(grid[1] * Bp * Kp * x_itemsize
                           + grid[0] * Kp * Np * w_itemsize
                           + Np * 4
                           + Bp * Np * out_itemsize),
    )

    out = pl.pallas_call(
        kernel,
        out_shape=jax.ShapeDtypeStruct((Bp, Np), out_dtype),
        grid_spec=pltpu.PrefetchScalarGridSpec(
            num_scalar_prefetch=0,
            grid=grid,
            in_specs=[
                pl.BlockSpec((tm, tk), lambda i, j, k: (i, k)),   # x tile
                pl.BlockSpec((tk, tn), lambda i, j, k: (k, j)),   # W^T tile
                pl.BlockSpec((1, tn), lambda i, j, k: (0, j)),    # bias tile
            ],
            out_specs=pl.BlockSpec((tm, tn), lambda i, j, k: (i, j)),
            scratch_shapes=scratch_shapes,
        ),
        compiler_params=pltpu.CompilerParams(
            dimension_semantics=("parallel", "parallel", "arbitrary"),
            vmem_limit_bytes=vmem_limit,
        ),
        cost_estimate=cost,
    )(x, w_t, bias2d)

    # Only slice if padding was actually introduced (common case: no-op).
    if Bp != B or Np != N:
        out = out[:B, :N]
    if squeeze_out:
        out = out[0]
    return out


# ---------------------------------------------------------------------------
# Demo / self-test
# ---------------------------------------------------------------------------
if __name__ == "__main__":
    # NCHW input flattened by _try_squeeze: (B=2, C=4, H=16, W=16) -> 1024 feats.
    B, C, H, W = 2, 4, 16, 16
    in_features = C * H * W          # 1024
    out_features = 32

    key = jax.random.PRNGKey(0)
    kx, kw, kb = jax.random.split(key, 3)

    x = jax.random.normal(kx, (B, C, H, W), dtype=jnp.float32)

    bound = 1.0 / (in_features ** 0.5)
    weight = jax.random.uniform(kw, (out_features, in_features),
                                minval=-bound, maxval=bound, dtype=jnp.float32)
    bias = jax.random.uniform(kb, (out_features,),
                              minval=-bound, maxval=bound, dtype=jnp.float32)

    y_ref = x.reshape(B, -1) @ weight.T + bias

    # f32 parity path (exact match with the PyTorch reference math).
    params_f32 = init_linear_params(weight, bias)
    y = jax.block_until_ready(linear_layer_forward(x, params_f32))
    assert y.shape == (B, out_features)
    assert jnp.allclose(y, y_ref, atol=1e-4, rtol=1e-4), "f32 mismatch vs reference"

    # bf16 weight-storage path (recommended on v6e/v7x): cast ONCE at init,
    # f32 accumulation inside the kernel.
    params_bf16 = init_linear_params(weight, bias, compute_dtype=jnp.bfloat16)
    y_bf16 = jax.block_until_ready(linear_layer_forward(x, params_bf16))
    assert y_bf16.shape == (B, out_features)
    assert jnp.allclose(y_bf16, y_ref, atol=1e-1, rtol=1e-1), "bf16 drift too large"

    print("KERNEL_OK")
</pallas_src>

<mosaic_0001>
module attributes {stable_mosaic.version = 11 : i64} {
  func.func @_linear_kernel_single(%arg0: i32, %arg1: i32, %arg2: i32, %arg3: memref<2x1024xf32, #tpu.memory_space<vmem>>, %arg4: memref<1024x32xf32, #tpu.memory_space<vmem>>, %arg5: memref<1x32xf32, #tpu.memory_space<vmem>>, %arg6: memref<2x32xf32, #tpu.memory_space<vmem>>) attributes {dimension_semantics = [#tpu.dimension_semantics<parallel>, #tpu.dimension_semantics<parallel>, #tpu.dimension_semantics<arbitrary>], iteration_bounds = array<i64: 1, 1, 1>, scalar_prefetch = 0 : i64, scratch_operands = 0 : i64, tpu.core_type = #tpu.core_type<tc>, window_params = [{transform_indices = @transform_0, window_bounds = array<i64: 2, 1024>}, {transform_indices = @transform_1, window_bounds = array<i64: 1024, 32>}, {transform_indices = @transform_2, window_bounds = array<i64: 1, 32>}, {transform_indices = @transform_3, window_bounds = array<i64: 2, 32>}]} {
    %c0 = arith.constant 0 : index
    %c0_0 = arith.constant 0 : index
    %0 = vector.load %arg3[%c0, %c0_0] : memref<2x1024xf32, #tpu.memory_space<vmem>>, vector<2x1024xf32>
    %c0_1 = arith.constant 0 : index
    %c0_2 = arith.constant 0 : index
    %1 = vector.load %arg4[%c0_1, %c0_2] : memref<1024x32xf32, #tpu.memory_space<vmem>>, vector<1024x32xf32>
    %cst = arith.constant dense<0.000000e+00> : vector<2x32xf32>
    %2 = tpu.matmul %0, %1, %cst {dimension_numbers = #tpu.dot_dimension_numbers<[1], [0], [0], [1], [0, 0, 1, 1], [], []>} : vector<2x1024xf32>, vector<1024x32xf32>, vector<2x32xf32> -> vector<2x32xf32>
    %c0_3 = arith.constant 0 : index
    %c0_4 = arith.constant 0 : index
    %3 = vector.load %arg5[%c0_3, %c0_4] : memref<1x32xf32, #tpu.memory_space<vmem>>, vector<1x32xf32>
    %4 = vector.broadcast %3 : vector<1x32xf32> to vector<2x32xf32>
    %5 = arith.addf %2, %4 : vector<2x32xf32>
    %c0_5 = arith.constant 0 : index
    %c0_6 = arith.constant 0 : index
    %6 = vector.load %arg6[%c0_5, %c0_6] : memref<2x32xf32, #tpu.memory_space<vmem>>, vector<2x32xf32>
    tpu.vector_store %arg6[%c0_5, %c0_6], %5 {strides = array<i32>} : memref<2x32xf32, #tpu.memory_space<vmem>>, vector<2x32xf32>,
    return
  }
  func.func @transform_0(%arg0: i32, %arg1: i32, %arg2: i32) -> (i32, i32) {
    %c0_i32 = arith.constant 0 : i32
    return %arg0, %arg2 : i32, i32
  }
  func.func @transform_1(%arg0: i32, %arg1: i32, %arg2: i32) -> (i32, i32) {
    %c0_i32 = arith.constant 0 : i32
    return %arg2, %arg1 : i32, i32
  }
  func.func @transform_2(%arg0: i32, %arg1: i32, %arg2: i32) -> (i32, i32) {
    %c0_i32 = arith.constant 0 : i32
    %c0_i32_0 = arith.constant 0 : i32
    return %c0_i32, %arg1 : i32, i32
  }
  func.func @transform_3(%arg0: i32, %arg1: i32, %arg2: i32) -> (i32, i32) {
    %c0_i32 = arith.constant 0 : i32
    return %arg0, %arg1 : i32, i32
  }
}

</mosaic_0001>

<bundles_post_ra>
// kernel: tpu_custom_call.1
= control target key start
LH: loop header
LB: loop body
LE: loop exit
PB: predicated region body
PF: predicated region fallthrough
CT: control target
= control target key end

     0   :  { %v659_v30 = vmov 1983009808   ;;  %v158_v32 = vlaneseq  ;;  %s1083_s0 = inlined_call_operand.vmem [shape: f32[2,1024], index: 0, kind: input, shape index: {}]   ;;  %s1084_s1 = inlined_call_operand.vmem [shape: f32[1024,32], index: 1, kind: input, shape index: {}]   ;;  %s1085_s2 = inlined_call_operand.vmem [shape: f32[1,32], index: 2, kind: input, shape index: {}]   ;;  %s1086_s3 = inlined_call_operand.hbm [shape: f32[2,32], index: 3, kind: output, shape index: {}]  }
   0x1   :  { %v48_v0 = vld [vmem:[%s1084_s1 + $0xf8] sm:$0xff]  ;;  %v47_v4 = vld [vmem:[%s1084_s1 + $0xf0] sm:$0xff]  ;;  %v46_v8 = vld [vmem:[%s1084_s1 + $0xe8] sm:$0xff]  ;;  %v156_v31 = vunpack.c.l.s4 %v659_v30 }
   0x2   :  { %v80_v1 = vld [vmem:[%s1084_s1 + $0x1f8] sm:$0xff]  ;;  %493 = vmatprep.subr.mxu0 %v48_v0  ;;  %v79_v5 = vld [vmem:[%s1084_s1 + $0x1f0] sm:$0xff]  ;;  %v78_v9 = vld [vmem:[%s1084_s1 + $0x1e8] sm:$0xff]  ;;  %v159_v42 = vshrl.u32 %v158_v32, 7 }
   0x3   :  { %v32_v2 = vld [vmem:[%s1084_s1 + $0x78] sm:$0xff]  ;;  %528 = vmatprep.subr.mxu1 %v80_v1  ;;  %v31_v6 = vld [vmem:[%s1084_s1 + $0x70] sm:$0xff]  ;;  %v30_v10 = vld [vmem:[%s1084_s1 + $0x68] sm:$0xff]  ;;  %v157_v41 = vunpack.c.0.s8 %v156_v31 }
   0x4   :  { %v64_v3 = vld [vmem:[%s1084_s1 + $0x178] sm:$0xff]  ;;  %494 = vmatpush3.msra.mxu0 %v32_v2  ;;  %v63_v7 = vld [vmem:[%s1084_s1 + $0x170] sm:$0xff]  ;;  %v62_v11 = vld [vmem:[%s1084_s1 + $0x168] sm:$0xff] }
   0x5   :  { %529 = vmatpush3.msra.mxu1 %v64_v3  ;;  %495 = vmatprep.subr.mxu0 %v47_v4  ;;  %v45_v12 = vld [vmem:[%s1084_s1 + $0xe0] sm:$0xff]  ;;  %v44_v16 = vld [vmem:[%s1084_s1 + $0xd8] sm:$0xff]  ;;  %v43_v20 = vld [vmem:[%s1084_s1 + $0xd0] sm:$0xff]  ;;  %v819_v51 = vsub.s32 %v157_v41, %v159_v42 }
   0x6   :  { %530 = vmatprep.subr.mxu1 %v79_v5  ;;  %496 = vmatpush3.msra.mxu0 %v31_v6  ;;  %v77_v13 = vld [vmem:[%s1084_s1 + $0x1e0] sm:$0xff]  ;;  %v76_v17 = vld [vmem:[%s1084_s1 + $0x1d8] sm:$0xff]  ;;  %v75_v21 = vld [vmem:[%s1084_s1 + $0x1d0] sm:$0xff] }
   0x7   :  { %531 = vmatpush3.msra.mxu1 %v63_v7  ;;  %497 = vmatprep.subr.mxu0 %v46_v8  ;;  %v29_v14 = vld [vmem:[%s1084_s1 + $0x60] sm:$0xff]  ;;  %v28_v18 = vld [vmem:[%s1084_s1 + $0x58] sm:$0xff]  ;;  %v27_v22 = vld [vmem:[%s1084_s1 + $0x50] sm:$0xff] }
   0x8   :  { %532 = vmatprep.subr.mxu1 %v78_v9  ;;  %v61_v15 = vld [vmem:[%s1084_s1 + $0x160] sm:$0xff]  ;;  %498 = vmatpush3.msra.mxu0 %v30_v10  ;;  %v60_v19 = vld [vmem:[%s1084_s1 + $0x158] sm:$0xff]  ;;  %v59_v23 = vld [vmem:[%s1084_s1 + $0x150] sm:$0xff] }
   0x9   :  { %533 = vmatpush3.msra.mxu1 %v62_v11  ;;  %499 = vmatprep.subr.mxu0 %v45_v12  ;;  %v42_v24 = vld [vmem:[%s1084_s1 + $0xc8] sm:$0xff]  ;;  %v41_v28 = vld [vmem:[%s1084_s1 + $0xc0] sm:$0xff]  ;;  %v40_v35 = vld [vmem:[%s1084_s1 + $0xb8] sm:$0xff] }
   0xa   :  { %534 = vmatprep.subr.mxu1 %v77_v13  ;;  %500 = vmatpush3.msra.mxu0 %v29_v14  ;;  %v74_v25 = vld [vmem:[%s1084_s1 + $0x1c8] sm:$0xff]  ;;  %v73_v29 = vld [vmem:[%s1084_s1 + $0x1c0] sm:$0xff]  ;;  %v72_v36 = vld [vmem:[%s1084_s1 + $0x1b8] sm:$0xff] }
   0xb   :  { %535 = vmatpush3.msra.mxu1 %v61_v15  ;;  %501 = vmatprep.subr.mxu0 %v44_v16  ;;  %v26_v26 = vld [vmem:[%s1084_s1 + $0x48] sm:$0xff]  ;;  %v25_v33 = vld [vmem:[%s1084_s1 + $0x40] sm:$0xff]  ;;  %v24_v37 = vld [vmem:[%s1084_s1 + $0x38] sm:$0xff] }
   0xc   :  { %536 = vmatprep.subr.mxu1 %v76_v17  ;;  %502 = vmatpush3.msra.mxu0 %v28_v18  ;;  %v58_v27 = vld [vmem:[%s1084_s1 + $0x148] sm:$0xff]  ;;  %v57_v34 = vld [vmem:[%s1084_s1 + $0x140] sm:$0xff]  ;;  %v56_v38 = vld [vmem:[%s1084_s1 + $0x138] sm:$0xff] }
   0xd   :  { %537 = vmatpush3.msra.mxu1 %v60_v19  ;;  %503 = vmatprep.subr.mxu0 %v43_v20  ;;  %v39_v39 = vld [vmem:[%s1084_s1 + $0xb0] sm:$0xff]  ;;  %v38_v45 = vld [vmem:[%s1084_s1 + $0xa8] sm:$0xff]  ;;  %v37_v49 = vld [vmem:[%s1084_s1 + $0xa0] sm:$0xff] }
   0xe   :  { %538 = vmatprep.subr.mxu1 %v75_v21  ;;  %504 = vmatpush3.msra.mxu0 %v27_v22  ;;  %v71_v40 = vld [vmem:[%s1084_s1 + $0x1b0] sm:$0xff]  ;;  %v70_v46 = vld [vmem:[%s1084_s1 + $0x1a8] sm:$0xff]  ;;  %v69_v50 = vld [vmem:[%s1084_s1 + $0x1a0] sm:$0xff] }
   0xf   :  { %539 = vmatpush3.msra.mxu1 %v59_v23  ;;  %505 = vmatprep.subr.mxu0 %v42_v24  ;;  %v23_v43 = vld [vmem:[%s1084_s1 + $0x30] sm:$0xff]  ;;  %v22_v47 = vld [vmem:[%s1084_s1 + $0x28] sm:$0xff]  ;;  %v21_v52 = vld [vmem:[%s1084_s1 + $0x20] sm:$0xff] }
  0x10   :  { %540 = vmatprep.subr.mxu1 %v74_v25  ;;  %506 = vmatpush3.msra.mxu0 %v26_v26  ;;  %v55_v44 = vld [vmem:[%s1084_s1 + $0x130] sm:$0xff]  ;;  %v54_v48 = vld [vmem:[%s1084_s1 + $0x128] sm:$0xff]  ;;  %v53_v53 = vld [vmem:[%s1084_s1 + $0x120] sm:$0xff] }
  0x11   :  { %541 = vmatpush3.msra.mxu1 %v58_v27  ;;  %507 = vmatprep.subr.mxu0 %v41_v28  ;;  %v15_v54 = vld [vmem:[%s1083_s0] sm:$0xff]  ;;  %v36_v55 = vld [vmem:[%s1084_s1 + $0x98] sm:$0xff]  ;;  %v35_v60 = vld [vmem:[%s1084_s1 + $0x90] sm:$0xff] }
  0x12   :  { %542 = vmatprep.subr.mxu1 %v73_v29  ;;  %508 = vmatpush3.msra.mxu0 %v25_v33  ;;  %v68_v56 = vld [vmem:[%s1084_s1 + $0x198] sm:$0xff]  ;;  %v154_v57 = vcombine.high %v15_v54, %v15_v54  ;;  %v67_v61 = vld [vmem:[%s1084_s1 + $0x190] sm:$0xff]  ;;  %v161_v62 = vrot.slane %v15_v54, %v819_v51  ;;  %v34_v1 = vld [vmem:[%s1084_s1 + $0x88] sm:$0xff] }
  0x13   :  { %543 = vmatpush3.msra.mxu1 %v57_v34  ;;  %509 = vmatprep.subr.mxu0 %v40_v35  ;;  %v20_v58 = vld [vmem:[%s1084_s1 + $0x18] sm:$0xff]  ;;  %v19_v63 = vld [vmem:[%s1084_s1 + $0x10] sm:$0xff]  ;;  %v66_v2 = vld [vmem:[%s1084_s1 + $0x188] sm:$0xff] }
  0x14   :  { %544 = vmatprep.subr.mxu1 %v72_v36  ;;  %510 = vmatpush3.msra.mxu0 %v24_v37  ;;  %v52_v59 = vld [vmem:[%s1084_s1 + $0x118] sm:$0xff]  ;;  %v51_v0 = vld [vmem:[%s1084_s1 + $0x110] sm:$0xff]  ;;  %v168_v3 = vrot.slane %v154_v57, %v819_v51  ;;  %v18_v4 = vld [vmem:[%s1084_s1 + $0x8] sm:$0xff]  ;;  %v169_v8 = vcombine.high %v161_v62, %v161_v62 }
  0x15   :  { %545 = vmatpush3.msra.mxu1 %v56_v38  ;;  %511 = vmatprep.subr.mxu0 %v39_v39  ;;  %v50_v5 = vld [vmem:[%s1084_s1 + $0x108] sm:$0xff]  ;;  %v33_v6 = vld [vmem:[%s1084_s1 + $0x80] sm:$0xff]  ;;  %v112_v12 = vld [vmem:[%s1084_s1 + $0x2f8] sm:$0xff] }
  0x16   :  { %546 = vmatprep.subr.mxu1 %v71_v40  ;;  %512 = vmatpush3.msra.mxu0 %v23_v43  ;;  %v65_v7 = vld [vmem:[%s1084_s1 + $0x180] sm:$0xff]  ;;  %v170_v11 = vcombine.high %v168_v3, %v168_v3  ;;  %v144_v13 = vld [vmem:[%s1084_s1 + $0x3f8] sm:$0xff]  ;;  %v111_v16 = vld [vmem:[%s1084_s1 + $0x2f0] sm:$0xff] }
  0x17   :  { %547 = vmatpush3.msra.mxu1 %v55_v44  ;;  %513 = vmatprep.subr.mxu0 %v38_v45  ;;  %v17_v9 = vld [vmem:[%s1084_s1] sm:$0xff]  ;;  %v96_v14 = vld [vmem:[%s1084_s1 + $0x278] sm:$0xff]  ;;  %v143_v17 = vld [vmem:[%s1084_s1 + $0x3f0] sm:$0xff] }
  0x18   :  { %548 = vmatprep.subr.mxu1 %v70_v46  ;;  %514 = vmatpush3.msra.mxu0 %v22_v47  ;;  %v49_v10 = vld [vmem:[%s1084_s1 + $0x100] sm:$0xff]  ;;  %v128_v15 = vld [vmem:[%s1084_s1 + $0x378] sm:$0xff]  ;;  %v95_v18 = vld [vmem:[%s1084_s1 + $0x270] sm:$0xff] }
  0x19   :  { %549 = vmatpush3.msra.mxu1 %v54_v48  ;;  %515 = vmatprep.subr.mxu0 %v37_v49  ;;  %v127_v19 = vld [vmem:[%s1084_s1 + $0x370] sm:$0xff]  ;;  %v110_v20 = vld [vmem:[%s1084_s1 + $0x2e8] sm:$0xff]  ;;  %v109_v24 = vld [vmem:[%s1084_s1 + $0x2e0] sm:$0xff] }
  0x1a   :  { %550 = vmatprep.subr.mxu1 %v69_v50  ;;  %516 = vmatpush3.msra.mxu0 %v21_v52  ;;  %v142_v21 = vld [vmem:[%s1084_s1 + $0x3e8] sm:$0xff]  ;;  %v141_v25 = vld [vmem:[%s1084_s1 + $0x3e0] sm:$0xff]  ;;  %v108_v28 = vld [vmem:[%s1084_s1 + $0x2d8] sm:$0xff] }
  0x1b   :  { %551 = vmatpush3.msra.mxu1 %v53_v53  ;;  %517 = vmatprep.subr.mxu0 %v36_v55  ;;  %v94_v22 = vld [vmem:[%s1084_s1 + $0x268] sm:$0xff]  ;;  %v93_v26 = vld [vmem:[%s1084_s1 + $0x260] sm:$0xff]  ;;  %v140_v29 = vld [vmem:[%s1084_s1 + $0x3d8] sm:$0xff] }
  0x1c   :  { %552 = vmatprep.subr.mxu1 %v68_v56  ;;  %518 = vmatpush3.msra.mxu0 %v20_v58  ;;  %v126_v23 = vld [vmem:[%s1084_s1 + $0x368] sm:$0xff]  ;;  %v125_v27 = vld [vmem:[%s1084_s1 + $0x360] sm:$0xff]  ;;  %v92_v30 = vld [vmem:[%s1084_s1 + $0x258] sm:$0xff] }
  0x1d   :  { %553 = vmatpush3.msra.mxu1 %v52_v59  ;;  %519 = vmatprep.subr.mxu0 %v35_v60  ;;  %v124_v31 = vld [vmem:[%s1084_s1 + $0x358] sm:$0xff]  ;;  %v107_v32 = vld [vmem:[%s1084_s1 + $0x2d0] sm:$0xff] }
  0x1e   :  { %554 = vmatprep.subr.mxu1 %v67_v61  ;;  %520 = vmatpush3.msra.mxu0 %v19_v63  ;;  %v139_v33 = vld [vmem:[%s1084_s1 + $0x3d0] sm:$0xff] }
  0x1f   :  { %555 = vmatpush3.msra.mxu1 %v51_v0  ;;  %521 = vmatprep.subr.mxu0 %v34_v1  ;;  %v91_v34 = vld [vmem:[%s1084_s1 + $0x250] sm:$0xff] }
  0x20   :  { %556 = vmatprep.subr.mxu1 %v66_v2  ;;  %522 = vmatpush3.msra.mxu0 %v18_v4  ;;  %v123_v35 = vld [vmem:[%s1084_s1 + $0x350] sm:$0xff] }
  0x21   :  { %557 = vmatpush3.msra.mxu1 %v50_v5  ;;  %523 = vmatprep.subr.mxu0 %v33_v6 }
  0x22   :  { %558 = vmatprep.subr.mxu1 %v65_v7  ;;  %524 = vmatpush3.msra.mxu0 %v17_v9 }
  0x23   :  { %260 = vmatprep.mubr.f32.mxu0 %v169_v8  ;;  %559 = vmatpush3.msra.mxu1 %v49_v10 }
  0x24   :  { %261 = vmatmul.mubr.f32.vlgmr.msra.gmra.mxu0 %v161_v62  ;;  %330 = vmatprep.mubr.f32.mxu1 %v170_v11 }
  0x25   :  { %563 = vmatprep.subr.mxu0 %v112_v12  ;;  %598 = vmatprep.subr.mxu1 %v144_v13 }
  0x26   :  { %331 = vmatmul.mubr.f32.vlgmr.msra.gmra.mxu1 %v168_v3  ;;  %564 = vmatpush3.msra.mxu0 %v96_v14 }
  0x27   :  { %599 = vmatpush3.msra.mxu1 %v128_v15  ;;  %565 = vmatprep.subr.mxu0 %v111_v16 }
  0x28   :  { %600 = vmatprep.subr.mxu1 %v143_v17  ;;  %566 = vmatpush3.msra.mxu0 %v95_v18 }
  0x29   :  { %601 = vmatpush3.msra.mxu1 %v127_v19  ;;  %567 = vmatprep.subr.mxu0 %v110_v20 }
  0x2a   :  { %602 = vmatprep.subr.mxu1 %v142_v21  ;;  %568 = vmatpush3.msra.mxu0 %v94_v22 }
  0x2b   :  { %603 = vmatpush3.msra.mxu1 %v126_v23  ;;  %569 = vmatprep.subr.mxu0 %v109_v24 }
  0x2c   :  { %604 = vmatprep.subr.mxu1 %v141_v25  ;;  %570 = vmatpush3.msra.mxu0 %v93_v26 }
  0x2d   :  { %605 = vmatpush3.msra.mxu1 %v125_v27  ;;  %571 = vmatprep.subr.mxu0 %v108_v28 }
  0x2e   :  { %606 = vmatprep.subr.mxu1 %v140_v29 }
  0x2f   :  { %8 = vsyncpa [#allocation3], 0  ;;  %572 = vmatpush3.msra.mxu0 %v92_v30  ;;  %607 = vmatpush3.msra.mxu1 %v124_v31  ;;  %v106_v36 = vld [vmem:[%s1084_s1 + $0x2c8] sm:$0xff]  ;;  %v105_v40 = vld [vmem:[%s1084_s1 + $0x2c0] sm:$0xff]  ;;  %vm476_vm0 = vcmask 254976  }
  0x30   :  { %v138_v37 = vld [vmem:[%s1084_s1 + $0x3c8] sm:$0xff]  ;;  %573 = vmatprep.subr.mxu0 %v107_v32  ;;  %608 = vmatprep.subr.mxu1 %v139_v33  ;;  %v137_v41 = vld [vmem:[%s1084_s1 + $0x3c0] sm:$0xff]  ;;  %v104_v44 = vld [vmem:[%s1084_s1 + $0x2b8] sm:$0xff] }
  0x31   :  { %v90_v38 = vld [vmem:[%s1084_s1 + $0x248] sm:$0xff]  ;;  %574 = vmatpush3.msra.mxu0 %v91_v34  ;;  %609 = vmatpush3.msra.mxu1 %v123_v35  ;;  %v89_v42 = vld [vmem:[%s1084_s1 + $0x240] sm:$0xff]  ;;  %v136_v45 = vld [vmem:[%s1084_s1 + $0x3b8] sm:$0xff] }
  0x32   :  { %v122_v39 = vld [vmem:[%s1084_s1 + $0x348] sm:$0xff]  ;;  %575 = vmatprep.subr.mxu0 %v106_v36  ;;  %610 = vmatprep.subr.mxu1 %v138_v37  ;;  %v121_v43 = vld [vmem:[%s1084_s1 + $0x340] sm:$0xff]  ;;  %v88_v46 = vld [vmem:[%s1084_s1 + $0x238] sm:$0xff] }
  0x33   :  { %576 = vmatpush3.msra.mxu0 %v90_v38  ;;  %611 = vmatpush3.msra.mxu1 %v122_v39  ;;  %v120_v47 = vld [vmem:[%s1084_s1 + $0x338] sm:$0xff]  ;;  %v103_v48 = vld [vmem:[%s1084_s1 + $0x2b0] sm:$0xff]  ;;  %v102_v53 = vld [vmem:[%s1084_s1 + $0x2a8] sm:$0xff] }
  0x34   :  { %577 = vmatprep.subr.mxu0 %v105_v40  ;;  %612 = vmatprep.subr.mxu1 %v137_v41  ;;  %v135_v49 = vld [vmem:[%s1084_s1 + $0x3b0] sm:$0xff]  ;;  %v134_v54 = vld [vmem:[%s1084_s1 + $0x3a8] sm:$0xff]  ;;  %v101_v58 = vld [vmem:[%s1084_s1 + $0x2a0] sm:$0xff] }
  0x35   :  { %578 = vmatpush3.msra.mxu0 %v89_v42  ;;  %613 = vmatpush3.msra.mxu1 %v121_v43  ;;  %v87_v50 = vld [vmem:[%s1084_s1 + $0x230] sm:$0xff]  ;;  %v16_v55 = vld [vmem:[%s1083_s0 + $0x8] sm:$0xff]  ;;  %v133_v59 = vld [vmem:[%s1084_s1 + $0x3a0] sm:$0xff] }
  0x36   :  { %579 = vmatprep.subr.mxu0 %v104_v44  ;;  %614 = vmatprep.subr.mxu1 %v136_v45  ;;  %v119_v52 = vld [vmem:[%s1084_s1 + $0x330] sm:$0xff]  ;;  %v86_v56 = vld [vmem:[%s1084_s1 + $0x228] sm:$0xff]  ;;  %v85_v60 = vld [vmem:[%s1084_s1 + $0x220] sm:$0xff]  ;;  %v171_v62 = vcombine.high %v16_v55, %v16_v55  ;;  %v178_v5 = vrot.slane %v16_v55, %v819_v51 }
  0x37   :  { %580 = vmatpush3.msra.mxu0 %v88_v46  ;;  %615 = vmatpush3.msra.mxu1 %v120_v47  ;;  %v118_v57 = vld [vmem:[%s1084_s1 + $0x328] sm:$0xff]  ;;  %v117_v61 = vld [vmem:[%s1084_s1 + $0x320] sm:$0xff]  ;;  %v100_v63 = vld [vmem:[%s1084_s1 + $0x298] sm:$0xff] }
  0x38   :  { %581 = vmatprep.subr.mxu0 %v103_v48  ;;  %616 = vmatprep.subr.mxu1 %v135_v49  ;;  %v132_v0 = vld [vmem:[%s1084_s1 + $0x398] sm:$0xff]  ;;  %v99_v3 = vld [vmem:[%s1084_s1 + $0x290] sm:$0xff]  ;;  %v185_v8 = vrot.slane %v171_v62, %v819_v51  ;;  %v98_v9 = vld [vmem:[%s1084_s1 + $0x288] sm:$0xff]  ;;  %v186_v14 = vcombine.high %v178_v5, %v178_v5 }
  0x39   :  { %582 = vmatpush3.msra.mxu0 %v87_v50  ;;  %617 = vmatpush3.msra.mxu1 %v119_v52  ;;  %v84_v1 = vld [vmem:[%s1084_s1 + $0x218] sm:$0xff]  ;;  %v131_v4 = vld [vmem:[%s1084_s1 + $0x390] sm:$0xff]  ;;  %v130_v10 = vld [vmem:[%s1084_s1 + $0x388] sm:$0xff] }
  0x3a   :  { %583 = vmatprep.subr.mxu0 %v102_v53  ;;  %618 = vmatprep.subr.mxu1 %v134_v54  ;;  %v116_v2 = vld [vmem:[%s1084_s1 + $0x318] sm:$0xff]  ;;  %v83_v6 = vld [vmem:[%s1084_s1 + $0x210] sm:$0xff]  ;;  %v82_v11 = vld [vmem:[%s1084_s1 + $0x208] sm:$0xff]  ;;  %v187_v16 = vcombine.high %v185_v8, %v185_v8 }
  0x3b   :  { %584 = vmatpush3.msra.mxu0 %v86_v56  ;;  %619 = vmatpush3.msra.mxu1 %v118_v57  ;;  %v115_v7 = vld [vmem:[%s1084_s1 + $0x310] sm:$0xff]  ;;  %v114_v51 = vld [vmem:[%s1084_s1 + $0x308] sm:$0xff]  ;;  %v97_v12 = vld [vmem:[%s1084_s1 + $0x280] sm:$0xff] }
  0x3c   :  { %585 = vmatprep.subr.mxu0 %v101_v58  ;;  %620 = vmatprep.subr.mxu1 %v133_v59  ;;  %v129_v13 = vld [vmem:[%s1084_s1 + $0x380] sm:$0xff] }
  0x3d   :  { %586 = vmatpush3.msra.mxu0 %v85_v60  ;;  %621 = vmatpush3.msra.mxu1 %v117_v61  ;;  %v81_v15 = vld [vmem:[%s1084_s1 + $0x200] sm:$0xff] }
  0x3e   :  { %587 = vmatprep.subr.mxu0 %v100_v63  ;;  %622 = vmatprep.subr.mxu1 %v132_v0  ;;  %v113_v17 = vld [vmem:[%s1084_s1 + $0x300] sm:$0xff]  ;;  %s660_s1 = smov [#allocation2]  }
  0x3f   :  { %588 = vmatpush3.msra.mxu0 %v84_v1  ;;  %623 = vmatpush3.msra.mxu1 %v116_v2  ;;  %v492_v22 = vld [vmem:[%s1085_s2] ss:$0 sm:$0xff]  ;;  %s484_s29 = sshll.u32 %s660_s1, 4  ;;  %s485_s29 = int_to_ptr.vmem [resolvable:$true] %s484_s29 }
  0x40   :  { %589 = vmatprep.subr.mxu0 %v99_v3  ;;  %624 = vmatprep.subr.mxu1 %v131_v4  ;;  %s637_s30 = scalar_lea.vmem %s485_s29, 32  ;;  %p642_p1 = scmp.lt.s32.totalorder %s485_s29, %s485_s29 }
  0x41   :  { %590 = vmatpush3.msra.mxu0 %v83_v6  ;;  %625 = vmatpush3.msra.mxu1 %v115_v7  ;;  %p638_p0 = scmp.ne.s32.totalorder %s485_s29, %s637_s30  ;;  %p643_p2 = scmp.lt.s32.totalorder %s637_s30, %s637_s30 }
  0x42   :  { %591 = vmatprep.subr.mxu0 %v98_v9  ;;  %626 = vmatprep.subr.mxu1 %v130_v10 }
  0x43   :  { %592 = vmatpush3.msra.mxu0 %v82_v11  ;;  %627 = vmatpush3.msra.mxu1 %v114_v51  ;;  %p644_p3 = por %p643_p2, %p642_p1 }
  0x44   :  { %593 = vmatprep.subr.mxu0 %v97_v12  ;;  %628 = vmatprep.subr.mxu1 %v129_v13 }
  0x45   :  { %594 = vmatpush3.msra.mxu0 %v81_v15  ;;  %400 = vmatprep.mubr.f32.mxu0 %v186_v14  ;;  %p645_p4 = pnand %p644_p3, %p638_p0 }
  0x46   :  { %629 = vmatpush3.msra.mxu1 %v113_v17  ;;  %470 = vmatprep.mubr.f32.mxu1 %v187_v16 }
  0x47   :  { %401 = vmatmul.mubr.f32.vlgmr.msra.gmra.mxu0 %v178_v5  ;;  %471 = vmatmul.mubr.f32.vlgmr.msra.gmra.mxu1 %v185_v8 }
  0xe4   :  { %v525_v18 = vpop.f32.mrf.mxu0 }
  0xe6   :  { %v560_v19 = vpop.f32.mrf.mxu1  ;;  %v526_v20 = vpop.f32.mrf.mxu0 }
  0xe7   :  { %v527_v21 = vadd.f32 %v526_v20, %v525_v18 }
  0xe8   :  { %v561_v23 = vpop.f32.mrf.mxu1 }
  0xe9   :  { %v263_v24 = vadd.f32 %v527_v21, %v492_v22  ;;  %v562_v25 = vadd.f32 %v561_v23, %v560_v19 }
  0xeb   :  { %v333_v30 = vadd.f32 %v562_v25, %v263_v24 }
 0x107   :  { %v595_v26 = vpop.f32.mrf.mxu0  ;;  %v630_v27 = vpop.f32.mrf.mxu1 }
 0x109   :  { %v596_v28 = vpop.f32.mrf.mxu0  ;;  %v631_v29 = vpop.f32.mrf.mxu1 }
 0x10a   :  { %v597_v31 = vadd.f32 %v596_v28, %v595_v26  ;;  %v632_v33 = vadd.f32 %v631_v29, %v630_v27 }
 0x10c   :  { %v403_v32 = vadd.f32 %v597_v31, %v333_v30 }
 0x10e   :  { %v473_v34 = vadd.f32 %v632_v33, %v403_v32 }
 0x110   :  { %477 = vst.msk [vmem:[#allocation2] sm:$0x3] %vm476_vm0, %v473_v34 }
 0x111   :  { %648 = shalt.err (!%p645_p4)
}
 0x112   :  { %487 = dma.vmem_to_hbm [thread:$0]  %s485_s29, 32, %s1086_s3, [#allocation3]  }
 0x113   :  { %657 = dma.done.wait [#allocation3], 32  }
 0x114   :  { %658 = vsyncadd [#allocation3], 4294967264 }
 0x115   :  { %491 = vsyncpa [#allocation3], 1 }

</bundles_post_ra>
